<compile_context>
chip_gen: v6e
topology: v6e:2x2x1
jax: 0.10.0
libtpu: 0.0.40
codegen_flags: <defaults>
</compile_context>

<pallas_src>
import jax
import jax.numpy as jnp
from jax.experimental import pallas as pl
from jax.experimental.pallas import tpu as pltpu


def _fc_kernel(x_ref, w_ref, b_ref, o_ref):
    # x_ref: (tm, K) f32   w_ref: (K, tn) bf16   b_ref: (1, tn) f32   o_ref: (tm, tn)
    # Cast X to bf16 in-register (VPU slot, hidden under MXU time); accumulate f32.
    x = x_ref[...].astype(jnp.bfloat16)
    acc = jnp.dot(x, w_ref[...], preferred_element_type=jnp.float32)
    o_ref[...] = (acc + b_ref[...]).astype(o_ref.dtype)


def prepare_encoder_image_params(weight, bias):
    """One-time parameter preparation (OUTSIDE the hot path).

    weight: (embed_size, img_dim) -- nn.Linear weight layout.
    bias:   (embed_size,)
    Returns:
      weight_t: (img_dim, embed_size) bf16  (pre-transposed, pre-cast)
      bias_row: (1, embed_size) f32
    """
    weight_t = jnp.asarray(weight).T.astype(jnp.bfloat16)
    bias_row = jnp.asarray(bias).astype(jnp.float32).reshape(1, -1)
    return weight_t, bias_row


def encoder_image_forward(images, weight_t, bias_row, *,
                          tm_cap=256, tn_cap=512, out_dtype=None,
                          vmem_budget_bytes=40 * 1024 * 1024):
    """Forward pass of EncoderImage: images @ W.T + b over the last dim.

    images:   (..., img_dim) float32 (or bf16)
    weight_t: (img_dim, embed_size) bf16 -- from prepare_encoder_image_params
    bias_row: (1, embed_size) f32       -- from prepare_encoder_image_params
    """
    K = images.shape[-1]
    assert weight_t.shape[0] == K, "weight_t must be (img_dim, embed_size)"
    N = weight_t.shape[1]
    lead_shape = images.shape[:-1]
    out_dtype = images.dtype if out_dtype is None else out_dtype

    # Flatten leading dims -> rows of a 2-D matmul.  No padding: ragged last
    # row tile is handled by Pallas' masked out-of-bounds store.
    x = images.reshape(-1, K)
    M = x.shape[0]

    # Row tile: the full M when small (one tile, no masking), else tm_cap.
    tm = M if M <= tm_cap else tm_cap
    m_tiles = pl.cdiv(M, tm)

    xb = x.dtype.itemsize
    wb = weight_t.dtype.itemsize
    bb = bias_row.dtype.itemsize
    ob = jnp.dtype(out_dtype).itemsize

    # Footprint of the resident-W configuration (pipeliner double-buffers each).
    full_n_bytes = 2 * (tm * K * xb + K * N * wb + N * bb + tm * N * ob)

    if full_n_bytes <= vmem_budget_bytes:
        # --- Path A (default for SCAN-sized shapes): full-width W panel stays
        # resident in VMEM.  Its block index is constant across the 1-D row
        # grid, so Pallas DMAs it from HBM exactly once.
        grid = (m_tiles,)
        in_specs = [
            pl.BlockSpec((tm, K), lambda i: (i, 0)),   # X row tile (f32)
            pl.BlockSpec((K, N), lambda i: (0, 0)),    # W: resident, fetched once
            pl.BlockSpec((1, N), lambda i: (0, 0)),    # bias: resident
        ]
        out_specs = pl.BlockSpec((tm, N), lambda i: (i, 0))
        dim_sem = ("parallel",)                        # v7x: 2 TCs split row tiles
        n_passes_x = 1
    else:
        # --- Path B (very large K*N): tile embed_size into <=tn_cap panels, but
        # put the N-panel index on the OUTER axis so W is still read only once
        # total while the smaller X operand is the one re-streamed.
        tn = tn_cap if N >= tn_cap else N              # tn_cap % 128 == 0, or tn == full N
        n_tiles = pl.cdiv(N, tn)
        grid = (n_tiles, m_tiles)                      # j outer (slow), i inner (fast)
        in_specs = [
            pl.BlockSpec((tm, K), lambda j, i: (i, 0)),
            pl.BlockSpec((K, tn), lambda j, i: (0, j)),
            pl.BlockSpec((1, tn), lambda j, i: (0, j)),
        ]
        out_specs = pl.BlockSpec((tm, tn), lambda j, i: (i, j))
        dim_sem = ("parallel", "parallel")
        n_passes_x = n_tiles
        # TODO(synk): for pathological K (img_dim >> 8k) also shrink tm to stay
        # inside the scoped-VMEM budget instead of relying on tn alone.

    # Accurate DMA estimate: X read n_passes_x times, W/bias once, output once.
    cost = pl.CostEstimate(
        flops=2 * M * K * N,
        transcendentals=0,
        bytes_accessed=(n_passes_x * M * K * xb
                        + K * N * wb
                        + N * bb
                        + M * N * ob),
    )

    out = pl.pallas_call(
        _fc_kernel,
        out_shape=jax.ShapeDtypeStruct((M, N), out_dtype),
        grid_spec=pltpu.PrefetchScalarGridSpec(
            num_scalar_prefetch=0,
            grid=grid,
            in_specs=in_specs,
            out_specs=out_specs,
        ),
        compiler_params=pltpu.CompilerParams(
            dimension_semantics=dim_sem,
            # Explicit scoped-VMEM limit: portable across v5e (16 MiB default),
            # v6e (32 MiB default) and v7x (64 MiB physical).
            vmem_limit_bytes=48 * 1024 * 1024,
        ),
        cost_estimate=cost,
    )(x, weight_t, bias_row)

    return out.reshape(*lead_shape, N)


if __name__ == "__main__":
    # Small shapes consistent with the module: (batch, n_regions, img_dim)
    batch, n_regions, img_dim, embed_size = 2, 8, 64, 128

    key = jax.random.PRNGKey(0)
    k_img, k_w, k_b = jax.random.split(key, 3)

    images = jax.random.normal(k_img, (batch, n_regions, img_dim), dtype=jnp.float32)

    # Deterministic parameter init mimicking nn.Linear default (uniform +-1/sqrt(fan_in))
    bound = 1.0 / (img_dim ** 0.5)
    weight = jax.random.uniform(k_w, (embed_size, img_dim),
                                minval=-bound, maxval=bound, dtype=jnp.float32)
    bias = jax.random.uniform(k_b, (embed_size,),
                              minval=-bound, maxval=bound, dtype=jnp.float32)

    # One-time parameter prep (transpose + bf16 cast + bias reshape), outside hot path.
    weight_t, bias_row = prepare_encoder_image_params(weight, bias)

    out = encoder_image_forward(images, weight_t, bias_row)
    out = jax.block_until_ready(out)

    # Reference: same math as torch nn.Linear with operands rounded to bf16
    # (the kernel's MXU compute dtype) and exact f32 accumulation.
    x32 = images.astype(jnp.bfloat16).astype(jnp.float32)
    w32 = weight.astype(jnp.bfloat16).astype(jnp.float32)
    ref = jnp.dot(x32.reshape(-1, img_dim), w32.T,
                  precision=jax.lax.Precision.HIGHEST)
    ref = ref.reshape(batch, n_regions, embed_size) + bias

    assert out.shape == (batch, n_regions, embed_size)
    assert jnp.allclose(out, ref, atol=2e-3, rtol=2e-3)

    print("KERNEL_OK")
</pallas_src>

<mosaic_0001>
module attributes {stable_mosaic.version = 11 : i64} {
  func.func @_fc_kernel(%arg0: i32, %arg1: memref<16x64xf32, #tpu.memory_space<vmem>>, %arg2: memref<64x128xbf16, #tpu.memory_space<vmem>>, %arg3: memref<1x128xf32, #tpu.memory_space<vmem>>, %arg4: memref<16x128xf32, #tpu.memory_space<vmem>>) attributes {dimension_semantics = [#tpu.dimension_semantics<parallel>], iteration_bounds = array<i64: 1>, scalar_prefetch = 0 : i64, scratch_operands = 0 : i64, tpu.core_type = #tpu.core_type<tc>, window_params = [{transform_indices = @transform_0, window_bounds = array<i64: 16, 64>}, {pipeline_mode = #tpu.pipeline_mode<synchronous>, transform_indices = @transform_1, window_bounds = array<i64: 64, 128>}, {pipeline_mode = #tpu.pipeline_mode<synchronous>, transform_indices = @transform_2, window_bounds = array<i64: 1, 128>}, {transform_indices = @transform_3, window_bounds = array<i64: 16, 128>}]} {
    %c0 = arith.constant 0 : index
    %c0_0 = arith.constant 0 : index
    %0 = vector.load %arg1[%c0, %c0_0] : memref<16x64xf32, #tpu.memory_space<vmem>>, vector<16x64xf32>
    %1 = arith.truncf %0 : vector<16x64xf32> to vector<16x64xbf16>
    %c0_1 = arith.constant 0 : index
    %c0_2 = arith.constant 0 : index
    %2 = vector.load %arg2[%c0_1, %c0_2] : memref<64x128xbf16, #tpu.memory_space<vmem>>, vector<64x128xbf16>
    %cst = arith.constant dense<0.000000e+00> : vector<16x128xf32>
    %3 = tpu.matmul %1, %2, %cst {dimension_numbers = #tpu.dot_dimension_numbers<[1], [0], [0], [1], [0, 0, 1, 1], [], []>} : vector<16x64xbf16>, vector<64x128xbf16>, vector<16x128xf32> -> vector<16x128xf32>
    %c0_3 = arith.constant 0 : index
    %c0_4 = arith.constant 0 : index
    %4 = vector.load %arg3[%c0_3, %c0_4] : memref<1x128xf32, #tpu.memory_space<vmem>>, vector<1x128xf32>
    %5 = vector.broadcast %4 : vector<1x128xf32> to vector<16x128xf32>
    %6 = arith.addf %3, %5 : vector<16x128xf32>
    %c0_5 = arith.constant 0 : index
    %c0_6 = arith.constant 0 : index
    %7 = vector.load %arg4[%c0_5, %c0_6] : memref<16x128xf32, #tpu.memory_space<vmem>>, vector<16x128xf32>
    tpu.vector_store %arg4[%c0_5, %c0_6], %6 {strides = array<i32>} : memref<16x128xf32, #tpu.memory_space<vmem>>, vector<16x128xf32>,
    return
  }
  func.func @transform_0(%arg0: i32) -> (i32, i32) {
    %c0_i32 = arith.constant 0 : i32
    %c0_i32_0 = arith.constant 0 : i32
    return %arg0, %c0_i32 : i32, i32
  }
  func.func @transform_1(%arg0: i32) -> (i32, i32) {
    %c0_i32 = arith.constant 0 : i32
    %c0_i32_0 = arith.constant 0 : i32
    %c0_i32_1 = arith.constant 0 : i32
    return %c0_i32, %c0_i32_0 : i32, i32
  }
  func.func @transform_2(%arg0: i32) -> (i32, i32) {
    %c0_i32 = arith.constant 0 : i32
    %c0_i32_0 = arith.constant 0 : i32
    %c0_i32_1 = arith.constant 0 : i32
    return %c0_i32, %c0_i32_0 : i32, i32
  }
  func.func @transform_3(%arg0: i32) -> (i32, i32) {
    %c0_i32 = arith.constant 0 : i32
    %c0_i32_0 = arith.constant 0 : i32
    return %arg0, %c0_i32 : i32, i32
  }
}

</mosaic_0001>

<bundles_post_ra>
// kernel: tpu_custom_call.1
= control target key start
LH: loop header
LB: loop body
LE: loop exit
PB: predicated region body
PF: predicated region fallthrough
CT: control target
= control target key end

     0   :  { %8 = vsyncpa [#allocation3], 0  ;;  %s300_s0 = inlined_call_operand.hbm [shape: f32[16,64], index: 0, kind: input, shape index: {}]   ;;  %s301_s1 = inlined_call_operand.hbm [shape: bf16[64,128], index: 1, kind: input, shape index: {}]   ;;  %s302_s2 = inlined_call_operand.vmem [shape: f32[1,128], index: 2, kind: input, shape index: {}]   ;;  %s303_s3 = inlined_call_operand.hbm [shape: f32[16,128], index: 3, kind: output, shape index: {}]  }
   0x1   :  { %9 = vsyncpa [#allocation6], 0 }
   0x2   :  { %10 = vsyncpa [#allocation4], 0  ;;  %s253_s12 = smov [#allocation2]  }
   0x3   :  { %s16_s13 = sshll.u32 %s253_s12, 4  ;;  %s17_s13 = int_to_ptr.vmem [resolvable:$true] %s16_s13 }
   0x4   :  { %s195_s14 = scalar_lea.vmem %s17_s13, 256  ;;  %p200_p1 = scmp.lt.s32.totalorder %s17_s13, %s17_s13 }
   0x5   :  { %p196_p0 = scmp.ne.s32.totalorder %s17_s13, %s195_s14  ;;  %p201_p2 = scmp.lt.s32.totalorder %s195_s14, %s195_s14 }
   0x7   :  { %p202_p3 = por %p201_p2, %p200_p1 }
   0x9   :  { %p203_p4 = pnand %p202_p3, %p196_p0 }
   0xb   :  { %206 = shalt.err (!%p203_p4)
}
   0xc   :  { %s254_s15 = smov 128   ;;  %s255_s16 = smov 8  }
   0xd   :  { %22 = dma.hbm_to_vmem [thread:$0]  %s300_s0, 256, %s17_s13, [#allocation3], %s254_s15, %s254_s15, %s255_s16  }
   0xe   :  { %s256_s19 = smov [#allocation5]  }
   0xf   :  { %s28_s20 = sshll.u32 %s256_s19, 4  ;;  %s29_s20 = int_to_ptr.vmem [resolvable:$true] %s28_s20 }
  0x10   :  { %s215_s21 = scalar_lea.vmem %s29_s20, 512  ;;  %p220_p6 = scmp.lt.s32.totalorder %s29_s20, %s29_s20 }
  0x11   :  { %p216_p5 = scmp.ne.s32.totalorder %s29_s20, %s215_s21  ;;  %p221_p7 = scmp.lt.s32.totalorder %s215_s21, %s215_s21 }
  0x13   :  { %p222_p8 = por %p221_p7, %p220_p6 }
  0x15   :  { %p223_p9 = pnand %p222_p8, %p216_p5 }
  0x17   :  { %226 = shalt.err (!%p223_p9)
}
  0x18   :  { %s257_s22 = smov 64   ;;  %s258_s23 = smov 4  }
  0x19   :  { %34 = dma.hbm_to_vmem [thread:$0]  %s301_s1, 512, %s29_s20, [#allocation6], %s257_s22, %s257_s22, %s258_s23  }
  0x1a   :  { %247 = dma.done.wait [#allocation3], 256  }
  0x1b   :  { %248 = vsyncadd [#allocation3], 4294967040 }
  0x1c   :  { %249 = dma.done.wait [#allocation6], 512  }
  0x1d   :  { %250 = vsyncadd [#allocation6], 4294966784  ;;  %v259_v0 = vmov 0.0   ;;  %vm260_vm0 = vmmov 0   ;;  %v183_v1 = vld [vmem:[#allocation5 + $0x18] sm:$0xff]   ;;  %v184_v2 = vld [vmem:[#allocation5 + $0x10] sm:$0xff]  }
  0x1e   :  { %162 = vmatprep.subr.bf16.mxu0 %v259_v0  ;;  %170 = vmatprep.mubr.msk.bf16.mxu0 %vm260_vm0, %v259_v0  ;;  %v185_v3 = vld [vmem:[#allocation5 + $0x8] sm:$0xff]   ;;  %v186_v4 = vld [vmem:[#allocation5] sm:$0xff]   ;;  %v44_v5 = vld [vmem:[#allocation2] sm:$0xff]  ;;  %vm86_vm1 = vcmask 523264   ;;  %s261_s26 = smov [#allocation7]  }
  0x1f   :  { %163 = vmatpush3.bf16.msra.mxu0 %v183_v1  ;;  %v45_v6 = vld [vmem:[#allocation2 + $0x8] sm:$0xff]  ;;  %v151_v8 = vld [vmem:[%s302_s2] ss:$0 sm:$0xff]  ;;  %s138_s27 = sshll.u32 %s261_s26, 4  ;;  %s139_s27 = int_to_ptr.vmem [resolvable:$true] %s138_s27 }
  0x20   :  { %164 = vmatprep.subr.bf16.mxu0 %v259_v0  ;;  %v46_v7 = vpack.c.bf16 %v45_v6, %v44_v5  ;;  %s227_s28 = scalar_lea.vmem %s139_s27, 256  ;;  %p232_p11 = scmp.lt.s32.totalorder %s139_s27, %s139_s27 }
  0x21   :  { %p228_p10 = scmp.ne.s32.totalorder %s139_s27, %s227_s28  ;;  %p233_p12 = scmp.lt.s32.totalorder %s227_s28, %s227_s28 }
  0x23   :  { %165 = vmatpush3.bf16.msra.mxu0 %v184_v2  ;;  %p234_p13 = por %p233_p12, %p232_p11 }
  0x24   :  { %166 = vmatprep.subr.bf16.mxu0 %v259_v0 }
  0x25   :  { %p235_p0 = pnand %p234_p13, %p228_p10 }
  0x27   :  { %167 = vmatpush3.bf16.msra.mxu0 %v185_v3 }
  0x28   :  { %168 = vmatprep.subr.bf16.mxu0 %v259_v0 }
  0x2b   :  { %169 = vmatpush3.bf16.msra.mxu0 %v186_v4 }
  0x2e   :  { %171 = vmatmul.mubr.msk.bf16.vlgmr.msra.gmra.mxu0 %vm86_vm1, %v46_v7 }
  0xee   :  { %v124_v9 = vpop.f32.mrf.mxu0 }
  0xef   :  { %v125_v10 = vadd.f32 %v151_v8, %v124_v9 }
  0xf0   :  { %v172_v11 = vpop.f32.mrf.mxu0 }
  0xf1   :  { %131 = vst [vmem:[#allocation7] sm:$0xff] %v125_v10 }
  0xf2   :  { %v127_v12 = vpop.f32.mrf.mxu0 }
  0xf3   :  { %v128_v13 = vadd.f32 %v151_v8, %v127_v12 }
  0xf4   :  { %v173_v14 = vpop.f32.mrf.mxu0 }
  0xf5   :  { %132 = vst [vmem:[#allocation7 + $0x8] sm:$0xff] %v128_v13 }
  0xf6   :  { %238 = shalt.err (!%p235_p0)
}
  0xf7   :  { %144 = dma.vmem_to_hbm [thread:$0]  %s139_s27, 256, %s303_s3, [#allocation4], %s254_s15, %s254_s15, %s255_s16  }
  0xf8   :  { %251 = dma.done.wait [#allocation4], 256  }
  0xf9   :  { %252 = vsyncadd [#allocation4], 4294967040 }
  0xfa   :  { %148 = vsyncpa [#allocation3], 1 }
  0xfb   :  { %149 = vsyncpa [#allocation6], 1 }
  0xfc   :  { %150 = vsyncpa [#allocation4], 1 }

</bundles_post_ra>
